<compile_context>
chip_gen: v7x
topology: tpu7x:2x2x1
jax: 0.10.0
libtpu: 0.0.40
codegen_flags: <defaults>
</compile_context>

<pallas_src>
import functools

import jax
import jax.numpy as jnp
from jax import lax
from jax.experimental import pallas as pl
from jax.experimental.pallas import tpu as pltpu


def _bilinear_matrix(out_size: int, in_size: int) -> jnp.ndarray:
    """(out_size, in_size) interpolation matrix matching PyTorch bilinear, align_corners=False."""
    scale = in_size / out_size
    dst = jnp.arange(out_size, dtype=jnp.float32)
    src = (dst + 0.5) * scale - 0.5
    src = jnp.maximum(src, 0.0)                    # PyTorch clamps negative coords to 0
    i0 = jnp.floor(src).astype(jnp.int32)
    i0 = jnp.minimum(i0, in_size - 1)
    i1 = jnp.minimum(i0 + 1, in_size - 1)
    frac = src - i0.astype(jnp.float32)
    w0, w1 = 1.0 - frac, frac
    m = (w0[:, None] * jax.nn.one_hot(i0, in_size, dtype=jnp.float32)
         + w1[:, None] * jax.nn.one_hot(i1, in_size, dtype=jnp.float32))
    return m


def _vmem_capacity_bytes() -> int:
    """Per-core VMEM capacity; falls back to the 128 MiB (v5e/v6e) size if unavailable."""
    try:
        return int(pltpu.get_tpu_info().vmem_capacity_bytes)
    except Exception:
        return 128 * 1024 * 1024


def _choose_block_planes(b, h_in, w_in, h_out, w_out, in_itemsize, mid_itemsize):
    """Planes per grid step (always a divisor of b) + vmem limit, sized per TPU generation."""
    vmem_cap = _vmem_capacity_bytes()
    small_vmem = vmem_cap <= 64 * 1024 * 1024          # v7x-style part: 64 MiB VMEM, 2 TCs
    if small_vmem:
        budget = 12 * 1024 * 1024                      # block working-set target
        vmem_limit = 48 * 1024 * 1024                  # headroom below 64 MiB physical
    else:
        budget = 24 * 1024 * 1024                      # 128 MiB parts (v5e / v6e)
        vmem_limit = 80 * 1024 * 1024
    vmem_limit = min(vmem_limit, max(vmem_cap - 16 * 1024 * 1024, 16 * 1024 * 1024))

    # Per-plane VMEM: double-buffered input + output tiles + single-buffered width-pass scratch.
    per_plane = (2 * (h_in * w_in + h_out * w_out) * in_itemsize
                 + h_in * w_out * mid_itemsize)
    cap = max(1, min(budget // per_plane, b))
    divisors = [d for d in range(1, cap + 1) if b % d == 0]
    if small_vmem and b > 1:
        # 2 TCs: prefer an even number of grid steps (>=2) so both cores get equal work.
        even_steps = [d for d in divisors if (b // d) >= 2 and (b // d) % 2 == 0]
        multi_step = [d for d in divisors if d < b]
        bb = max(even_steps or multi_step or divisors)
    else:
        bb = max(divisors)
    return int(bb), int(vmem_limit)


def _interp_kernel(x_ref, wwt_ref, wh_ref, o_ref, *scratch,
                   bb, h_in, tall_width, unroll):
    # x_ref  : (bb, h_in, w_in)   input planes (native dtype)
    # wwt_ref: (w_in, w_out)      width matrix, pre-transposed (f32 or bf16)
    # wh_ref : (h_out, h_in)      height matrix                (f32 or bf16)
    # o_ref  : (bb, h_out, w_out)
    # scratch: (bb*h_in, w_out)   width-pass intermediate (only when tall_width)
    wwt = wwt_ref[...]
    wh = wh_ref[...]
    w_in = wwt.shape[0]

    if tall_width:
        # Width pass: all bb planes in ONE tall MXU matmul (M = bb*h_in).  h_in % 8 == 0,
        # so merging the leading dims is a free relayout.  f32 accumulate, store in the
        # intermediate dtype (bf16 stays bf16 for the fast MXU path in the height pass).
        xw_ref = scratch[0]
        x2 = x_ref[...].reshape(bb * h_in, w_in)
        xw_ref[...] = jnp.dot(x2, wwt,
                              preferred_element_type=jnp.float32).astype(xw_ref.dtype)

    def plane(p):
        if tall_width:
            if isinstance(p, int):
                start = p * h_in
            else:
                start = pl.multiple_of(p * h_in, h_in)
            xw_p = scratch[0][pl.ds(start, h_in), :]            # (h_in, w_out)
        else:
            # h_in not 8-aligned: do the width pass per plane (no relayout needed).
            xw_p = jnp.dot(x_ref[p], wwt,
                           preferred_element_type=jnp.float32).astype(wh.dtype)
        # Height pass: plain 2-D matmul, result written straight into the output block —
        # no broadcast of Wh, no full (bb, h_out, w_out) f32 temporary.
        o_ref[p] = jnp.dot(wh, xw_p,
                           preferred_element_type=jnp.float32).astype(o_ref.dtype)

    if bb <= 16:
        for p in range(bb):
            plane(p)
    else:
        def body(p, carry):
            plane(p)
            return carry
        lax.fori_loop(0, bb, body, 0, unroll=unroll)


class Interpolate:
    """JAX/Pallas equivalent of the PyTorch Interpolate module (bilinear, align_corners=False)."""

    def __init__(self, size, mode="bilinear"):
        assert mode == "bilinear", "only bilinear mode implemented"
        # TODO(synk): 'nearest' / 'bicubic' modes not implemented (module only needs bilinear).
        if isinstance(size, int):
            size = (size, size)
        self.size = (int(size[0]), int(size[1]))
        self.mode = mode
        self._weight_cache = {}  # (h_in, w_in, dtype) -> (wh, ww_t)

    def _weights(self, h_in, w_in, dtype):
        key = (h_in, w_in, jnp.dtype(dtype).name)
        if key not in self._weight_cache:
            h_out, w_out = self.size
            wh = _bilinear_matrix(h_out, h_in).astype(dtype)        # (h_out, h_in)
            ww_t = _bilinear_matrix(w_out, w_in).T.astype(dtype)    # (w_in, w_out)
            self._weight_cache[key] = (wh, ww_t)
        return self._weight_cache[key]

    def __call__(self, x):
        n, c, h_in, w_in = x.shape
        h_out, w_out = self.size

        # bf16 inputs get bf16 weights/intermediate (native MXU path); everything else f32.
        w_dtype = jnp.bfloat16 if x.dtype == jnp.bfloat16 else jnp.float32
        wh, ww_t = self._weights(h_in, w_in, w_dtype)

        b = n * c
        bb, vmem_limit = _choose_block_planes(
            b, h_in, w_in, h_out, w_out,
            jnp.dtype(x.dtype).itemsize, jnp.dtype(w_dtype).itemsize)
        grid = (b // bb,)

        tall_width = (h_in % 8 == 0)
        scratch_shapes = ([pltpu.VMEM((bb * h_in, w_out), w_dtype)]
                          if tall_width else [])

        x3d = x.reshape(b, h_in, w_in)     # free row-major reshape, native dtype

        kernel = functools.partial(_interp_kernel, bb=bb, h_in=h_in,
                                   tall_width=tall_width, unroll=min(bb, 8))

        out3d = pl.pallas_call(
            kernel,
            out_shape=jax.ShapeDtypeStruct((b, h_out, w_out), x.dtype),
            grid_spec=pltpu.PrefetchScalarGridSpec(
                num_scalar_prefetch=0,
                grid=grid,
                in_specs=[
                    pl.BlockSpec((bb, h_in, w_in), lambda i: (i, 0, 0)),
                    pl.BlockSpec((w_in, w_out), lambda i: (0, 0)),   # resident in VMEM
                    pl.BlockSpec((h_out, h_in), lambda i: (0, 0)),   # resident in VMEM
                ],
                out_specs=pl.BlockSpec((bb, h_out, w_out), lambda i: (i, 0, 0)),
                scratch_shapes=scratch_shapes,
            ),
            compiler_params=pltpu.CompilerParams(
                dimension_semantics=("parallel",),
                vmem_limit_bytes=vmem_limit,
            ),
        )(x3d, ww_t, wh)

        return out3d.reshape(n, c, h_out, w_out)


def _reference(x, size):
    """Pure-JAX reference: same align_corners=False bilinear, dense form."""
    h_in, w_in = x.shape[2], x.shape[3]
    h_out, w_out = size
    wh = _bilinear_matrix(h_out, h_in)
    ww = _bilinear_matrix(w_out, w_in)
    return jnp.einsum("oh,nchw,pw->ncop", wh, x.astype(jnp.float32), ww)


if __name__ == "__main__":
    key = jax.random.PRNGKey(0)
    x = jax.random.normal(key, (2, 4, 16, 16), dtype=jnp.float32)

    module = Interpolate(size=(32, 32), mode="bilinear")
    y = jax.block_until_ready(module(x))

    y_ref = _reference(x, (32, 32))
    assert y.shape == (2, 4, 32, 32)
    assert y.dtype == x.dtype            # PyTorch F.interpolate preserves the input dtype
    assert jnp.allclose(y.astype(jnp.float32), y_ref, atol=1e-5, rtol=1e-5)

    # bf16 smoke test: exercises the native-bf16 weight/intermediate path.
    xb = x.astype(jnp.bfloat16)
    yb = jax.block_until_ready(module(xb))
    assert yb.shape == (2, 4, 32, 32) and yb.dtype == jnp.bfloat16
    assert bool(jnp.all(jnp.isfinite(yb.astype(jnp.float32))))

    print("KERNEL_OK")
</pallas_src>

<mosaic_0001>
module attributes {stable_mosaic.version = 11 : i64} {
  func.func @_interp_kernel(%arg0: i32, %arg1: memref<8x16x16xf32, #tpu.memory_space<vmem>>, %arg2: memref<16x32xf32, #tpu.memory_space<vmem>>, %arg3: memref<32x16xf32, #tpu.memory_space<vmem>>, %arg4: memref<8x32x32xf32, #tpu.memory_space<vmem>>, %arg5: memref<128x32xf32, #tpu.memory_space<vmem>>) attributes {dimension_semantics = [#tpu.dimension_semantics<parallel>], iteration_bounds = array<i64: 1>, scalar_prefetch = 0 : i64, scratch_operands = 1 : i64, tpu.core_type = #tpu.core_type<tc>, window_params = [{transform_indices = @transform_0, window_bounds = array<i64: 8, 16, 16>}, {pipeline_mode = #tpu.pipeline_mode<synchronous>, transform_indices = @transform_1, window_bounds = array<i64: 16, 32>}, {pipeline_mode = #tpu.pipeline_mode<synchronous>, transform_indices = @transform_2, window_bounds = array<i64: 32, 16>}, {transform_indices = @transform_3, window_bounds = array<i64: 8, 32, 32>}]} {
    %c0 = arith.constant 0 : index
    %c0_0 = arith.constant 0 : index
    %0 = vector.load %arg2[%c0, %c0_0] : memref<16x32xf32, #tpu.memory_space<vmem>>, vector<16x32xf32>
    %c0_1 = arith.constant 0 : index
    %c0_2 = arith.constant 0 : index
    %1 = vector.load %arg3[%c0_1, %c0_2] : memref<32x16xf32, #tpu.memory_space<vmem>>, vector<32x16xf32>
    %c0_3 = arith.constant 0 : index
    %c0_4 = arith.constant 0 : index
    %c0_5 = arith.constant 0 : index
    %2 = vector.load %arg1[%c0_3, %c0_4, %c0_5] : memref<8x16x16xf32, #tpu.memory_space<vmem>>, vector<8x16x16xf32>
    %3 = vector.shape_cast %2 : vector<8x16x16xf32> to vector<128x16xf32>
    %cst = arith.constant dense<0.000000e+00> : vector<128x32xf32>
    %4 = tpu.matmul %3, %0, %cst {dimension_numbers = #tpu.dot_dimension_numbers<[1], [0], [0], [1], [0, 0, 1, 1], [], []>} : vector<128x16xf32>, vector<16x32xf32>, vector<128x32xf32> -> vector<128x32xf32>
    %c0_6 = arith.constant 0 : index
    %c0_7 = arith.constant 0 : index
    %5 = vector.load %arg5[%c0_6, %c0_7] : memref<128x32xf32, #tpu.memory_space<vmem>>, vector<128x32xf32>
    tpu.vector_store %arg5[%c0_6, %c0_7], %4 {strides = array<i32>} : memref<128x32xf32, #tpu.memory_space<vmem>>, vector<128x32xf32>,
    %c0_8 = arith.constant 0 : index
    %c0_9 = arith.constant 0 : index
    %6 = vector.load %arg5[%c0_8, %c0_9] : memref<128x32xf32, #tpu.memory_space<vmem>>, vector<16x32xf32>
    %cst_10 = arith.constant dense<0.000000e+00> : vector<32x32xf32>
    %7 = tpu.matmul %1, %6, %cst_10 {dimension_numbers = #tpu.dot_dimension_numbers<[1], [0], [0], [1], [0, 0, 1, 1], [], []>} : vector<32x16xf32>, vector<16x32xf32>, vector<32x32xf32> -> vector<32x32xf32>
    %c0_11 = arith.constant 0 : index
    %c0_12 = arith.constant 0 : index
    %c0_13 = arith.constant 0 : index
    %8 = vector.load %arg4[%c0_11, %c0_12, %c0_13] : memref<8x32x32xf32, #tpu.memory_space<vmem>>, vector<1x32x32xf32>
    %9 = vector.shape_cast %8 : vector<1x32x32xf32> to vector<32x32xf32>
    %10 = vector.shape_cast %7 : vector<32x32xf32> to vector<1x32x32xf32>
    tpu.vector_store %arg4[%c0_11, %c0_12, %c0_13], %10 {strides = array<i32>} : memref<8x32x32xf32, #tpu.memory_space<vmem>>, vector<1x32x32xf32>,
    %c16 = arith.constant 16 : index
    %c0_14 = arith.constant 0 : index
    %11 = vector.load %arg5[%c16, %c0_14] : memref<128x32xf32, #tpu.memory_space<vmem>>, vector<16x32xf32>
    %cst_15 = arith.constant dense<0.000000e+00> : vector<32x32xf32>
    %12 = tpu.matmul %1, %11, %cst_15 {dimension_numbers = #tpu.dot_dimension_numbers<[1], [0], [0], [1], [0, 0, 1, 1], [], []>} : vector<32x16xf32>, vector<16x32xf32>, vector<32x32xf32> -> vector<32x32xf32>
    %c1 = arith.constant 1 : index
    %c0_16 = arith.constant 0 : index
    %c0_17 = arith.constant 0 : index
    %13 = vector.load %arg4[%c1, %c0_16, %c0_17] : memref<8x32x32xf32, #tpu.memory_space<vmem>>, vector<1x32x32xf32>
    %14 = vector.shape_cast %13 : vector<1x32x32xf32> to vector<32x32xf32>
    %15 = vector.shape_cast %12 : vector<32x32xf32> to vector<1x32x32xf32>
    tpu.vector_store %arg4[%c1, %c0_16, %c0_17], %15 {strides = array<i32>} : memref<8x32x32xf32, #tpu.memory_space<vmem>>, vector<1x32x32xf32>,
    %c32 = arith.constant 32 : index
    %c0_18 = arith.constant 0 : index
    %16 = vector.load %arg5[%c32, %c0_18] : memref<128x32xf32, #tpu.memory_space<vmem>>, vector<16x32xf32>
    %cst_19 = arith.constant dense<0.000000e+00> : vector<32x32xf32>
    %17 = tpu.matmul %1, %16, %cst_19 {dimension_numbers = #tpu.dot_dimension_numbers<[1], [0], [0], [1], [0, 0, 1, 1], [], []>} : vector<32x16xf32>, vector<16x32xf32>, vector<32x32xf32> -> vector<32x32xf32>
    %c2 = arith.constant 2 : index
    %c0_20 = arith.constant 0 : index
    %c0_21 = arith.constant 0 : index
    %18 = vector.load %arg4[%c2, %c0_20, %c0_21] : memref<8x32x32xf32, #tpu.memory_space<vmem>>, vector<1x32x32xf32>
    %19 = vector.shape_cast %18 : vector<1x32x32xf32> to vector<32x32xf32>
    %20 = vector.shape_cast %17 : vector<32x32xf32> to vector<1x32x32xf32>
    tpu.vector_store %arg4[%c2, %c0_20, %c0_21], %20 {strides = array<i32>} : memref<8x32x32xf32, #tpu.memory_space<vmem>>, vector<1x32x32xf32>,
    %c48 = arith.constant 48 : index
    %c0_22 = arith.constant 0 : index
    %21 = vector.load %arg5[%c48, %c0_22] : memref<128x32xf32, #tpu.memory_space<vmem>>, vector<16x32xf32>
    %cst_23 = arith.constant dense<0.000000e+00> : vector<32x32xf32>
    %22 = tpu.matmul %1, %21, %cst_23 {dimension_numbers = #tpu.dot_dimension_numbers<[1], [0], [0], [1], [0, 0, 1, 1], [], []>} : vector<32x16xf32>, vector<16x32xf32>, vector<32x32xf32> -> vector<32x32xf32>
    %c3 = arith.constant 3 : index
    %c0_24 = arith.constant 0 : index
    %c0_25 = arith.constant 0 : index
    %23 = vector.load %arg4[%c3, %c0_24, %c0_25] : memref<8x32x32xf32, #tpu.memory_space<vmem>>, vector<1x32x32xf32>
    %24 = vector.shape_cast %23 : vector<1x32x32xf32> to vector<32x32xf32>
    %25 = vector.shape_cast %22 : vector<32x32xf32> to vector<1x32x32xf32>
    tpu.vector_store %arg4[%c3, %c0_24, %c0_25], %25 {strides = array<i32>} : memref<8x32x32xf32, #tpu.memory_space<vmem>>, vector<1x32x32xf32>,
    %c64 = arith.constant 64 : index
    %c0_26 = arith.constant 0 : index
    %26 = vector.load %arg5[%c64, %c0_26] : memref<128x32xf32, #tpu.memory_space<vmem>>, vector<16x32xf32>
    %cst_27 = arith.constant dense<0.000000e+00> : vector<32x32xf32>
    %27 = tpu.matmul %1, %26, %cst_27 {dimension_numbers = #tpu.dot_dimension_numbers<[1], [0], [0], [1], [0, 0, 1, 1], [], []>} : vector<32x16xf32>, vector<16x32xf32>, vector<32x32xf32> -> vector<32x32xf32>
    %c4 = arith.constant 4 : index
    %c0_28 = arith.constant 0 : index
    %c0_29 = arith.constant 0 : index
    %28 = vector.load %arg4[%c4, %c0_28, %c0_29] : memref<8x32x32xf32, #tpu.memory_space<vmem>>, vector<1x32x32xf32>
    %29 = vector.shape_cast %28 : vector<1x32x32xf32> to vector<32x32xf32>
    %30 = vector.shape_cast %27 : vector<32x32xf32> to vector<1x32x32xf32>
    tpu.vector_store %arg4[%c4, %c0_28, %c0_29], %30 {strides = array<i32>} : memref<8x32x32xf32, #tpu.memory_space<vmem>>, vector<1x32x32xf32>,
    %c80 = arith.constant 80 : index
    %c0_30 = arith.constant 0 : index
    %31 = vector.load %arg5[%c80, %c0_30] : memref<128x32xf32, #tpu.memory_space<vmem>>, vector<16x32xf32>
    %cst_31 = arith.constant dense<0.000000e+00> : vector<32x32xf32>
    %32 = tpu.matmul %1, %31, %cst_31 {dimension_numbers = #tpu.dot_dimension_numbers<[1], [0], [0], [1], [0, 0, 1, 1], [], []>} : vector<32x16xf32>, vector<16x32xf32>, vector<32x32xf32> -> vector<32x32xf32>
    %c5 = arith.constant 5 : index
    %c0_32 = arith.constant 0 : index
    %c0_33 = arith.constant 0 : index
    %33 = vector.load %arg4[%c5, %c0_32, %c0_33] : memref<8x32x32xf32, #tpu.memory_space<vmem>>, vector<1x32x32xf32>
    %34 = vector.shape_cast %33 : vector<1x32x32xf32> to vector<32x32xf32>
    %35 = vector.shape_cast %32 : vector<32x32xf32> to vector<1x32x32xf32>
    tpu.vector_store %arg4[%c5, %c0_32, %c0_33], %35 {strides = array<i32>} : memref<8x32x32xf32, #tpu.memory_space<vmem>>, vector<1x32x32xf32>,
    %c96 = arith.constant 96 : index
    %c0_34 = arith.constant 0 : index
    %36 = vector.load %arg5[%c96, %c0_34] : memref<128x32xf32, #tpu.memory_space<vmem>>, vector<16x32xf32>
    %cst_35 = arith.constant dense<0.000000e+00> : vector<32x32xf32>
    %37 = tpu.matmul %1, %36, %cst_35 {dimension_numbers = #tpu.dot_dimension_numbers<[1], [0], [0], [1], [0, 0, 1, 1], [], []>} : vector<32x16xf32>, vector<16x32xf32>, vector<32x32xf32> -> vector<32x32xf32>
    %c6 = arith.constant 6 : index
    %c0_36 = arith.constant 0 : index
    %c0_37 = arith.constant 0 : index
    %38 = vector.load %arg4[%c6, %c0_36, %c0_37] : memref<8x32x32xf32, #tpu.memory_space<vmem>>, vector<1x32x32xf32>
    %39 = vector.shape_cast %38 : vector<1x32x32xf32> to vector<32x32xf32>
    %40 = vector.shape_cast %37 : vector<32x32xf32> to vector<1x32x32xf32>
    tpu.vector_store %arg4[%c6, %c0_36, %c0_37], %40 {strides = array<i32>} : memref<8x32x32xf32, #tpu.memory_space<vmem>>, vector<1x32x32xf32>,
    %c112 = arith.constant 112 : index
    %c0_38 = arith.constant 0 : index
    %41 = vector.load %arg5[%c112, %c0_38] : memref<128x32xf32, #tpu.memory_space<vmem>>, vector<16x32xf32>
    %cst_39 = arith.constant dense<0.000000e+00> : vector<32x32xf32>
    %42 = tpu.matmul %1, %41, %cst_39 {dimension_numbers = #tpu.dot_dimension_numbers<[1], [0], [0], [1], [0, 0, 1, 1], [], []>} : vector<32x16xf32>, vector<16x32xf32>, vector<32x32xf32> -> vector<32x32xf32>
    %c7 = arith.constant 7 : index
    %c0_40 = arith.constant 0 : index
    %c0_41 = arith.constant 0 : index
    %43 = vector.load %arg4[%c7, %c0_40, %c0_41] : memref<8x32x32xf32, #tpu.memory_space<vmem>>, vector<1x32x32xf32>
    %44 = vector.shape_cast %43 : vector<1x32x32xf32> to vector<32x32xf32>
    %45 = vector.shape_cast %42 : vector<32x32xf32> to vector<1x32x32xf32>
    tpu.vector_store %arg4[%c7, %c0_40, %c0_41], %45 {strides = array<i32>} : memref<8x32x32xf32, #tpu.memory_space<vmem>>, vector<1x32x32xf32>,
    return
  }
  func.func @transform_0(%arg0: i32) -> (i32, i32, i32) {
    %c0_i32 = arith.constant 0 : i32
    %c0_i32_0 = arith.constant 0 : i32
    %c0_i32_1 = arith.constant 0 : i32
    return %arg0, %c0_i32, %c0_i32_0 : i32, i32, i32
  }
  func.func @transform_1(%arg0: i32) -> (i32, i32) {
    %c0_i32 = arith.constant 0 : i32
    %c0_i32_0 = arith.constant 0 : i32
    %c0_i32_1 = arith.constant 0 : i32
    return %c0_i32, %c0_i32_0 : i32, i32
  }
  func.func @transform_2(%arg0: i32) -> (i32, i32) {
    %c0_i32 = arith.constant 0 : i32
    %c0_i32_0 = arith.constant 0 : i32
    %c0_i32_1 = arith.constant 0 : i32
    return %c0_i32, %c0_i32_0 : i32, i32
  }
  func.func @transform_3(%arg0: i32) -> (i32, i32, i32) {
    %c0_i32 = arith.constant 0 : i32
    %c0_i32_0 = arith.constant 0 : i32
    %c0_i32_1 = arith.constant 0 : i32
    return %arg0, %c0_i32, %c0_i32_0 : i32, i32, i32
  }
}

</mosaic_0001>

<bundles_post_ra>
// kernel: tpu_custom_call.1
= control target key start
LH: loop header
LB: loop body
LE: loop exit
PB: predicated region body
PF: predicated region fallthrough
CT: control target
= control target key end

     0   :  { %8 = vsyncpa [#allocation4], 0  ;;  %s1641_s0 = inlined_call_operand.hbm [shape: f32[8,16,16], index: 0, kind: input, shape index: {}]   ;;  %s1642_s1 = inlined_call_operand.hbm [shape: f32[16,32], index: 1, kind: input, shape index: {}]   ;;  %s1643_s2 = inlined_call_operand.hbm [shape: f32[32,16], index: 2, kind: input, shape index: {}]   ;;  %s1644_s3 = inlined_call_operand.hbm [shape: f32[8,32,32], index: 3, kind: output, shape index: {}]  }
   0x1   :  { %9 = vsyncpa [#allocation7], 0 }
   0x2   :  { %10 = vsyncpa [#allocation5], 0  ;;  %s1412_s12 = smov [#allocation6]   ;;  %s1413_s14 = smov [#allocation3]  }
   0x3   :  { %s28_s13 = sshll.u32 %s1412_s12, 4  ;;  %s16_s15 = sshll.u32 %s1413_s14, 4  ;;  %s29_s13 = int_to_ptr.vmem [resolvable:$true] %s28_s13  ;;  %s1438_s15 = int_to_ptr.vmem [resolvable:$true] %s16_s15 }
   0x4   :  { %s1318_s18 = scalar_lea.hbm %s1642_s1, 256 }
   0x5   :  { %p1319_p0 = scmp.ne.s32.totalorder %s1642_s1, %s1318_s18  ;;  %p1322_p1 = scmp.lt.u32.totalorder %s1318_s18, %s1642_s1 }
   0x7   :  { %p1324_p2 = pnand %p1322_p1, %p1319_p0 }
   0x9   :  { %1327 = shalt.err (!%p1324_p2)
}
   0xa   :  { %s1328_s23 = scalar_lea.vmem %s29_s13, 256  ;;  %p1333_p4 = scmp.lt.s32.totalorder %s29_s13, %s29_s13 }
   0xb   :  { %p1329_p3 = scmp.ne.s32.totalorder %s29_s13, %s1328_s23  ;;  %p1334_p5 = scmp.lt.s32.totalorder %s1328_s23, %s1328_s23 }
   0xd   :  { %p1335_p6 = por %p1334_p5, %p1333_p4 }
   0xf   :  { %p1336_p7 = pnand %p1335_p6, %p1329_p3 }
  0x11   :  { %1339 = shalt.err (!%p1336_p7)
}
  0x12   :  { %s1414_s24 = smov 128   ;;  %s1415_s25 = smov 8  }
  0x13   :  { %34 = dma.hbm_to_vmem [thread:$0]  %s1642_s1, 256, %s29_s13, [#allocation7], %s1414_s24, %s1414_s24, %s1415_s25  }
  0x14   :  { %s1340_s30 = scalar_lea.hbm %s1641_s0, 2048 }
  0x15   :  { %p1341_p8 = scmp.ne.s32.totalorder %s1641_s0, %s1340_s30  ;;  %p1344_p9 = scmp.lt.u32.totalorder %s1340_s30, %s1641_s0 }
  0x17   :  { %p1346_p10 = pnand %p1344_p9, %p1341_p8 }
  0x19   :  { %1349 = shalt.err (!%p1346_p10)
}
  0x1a   :  { %s1350_s8 = scalar_lea.vmem %s1438_s15, 2048  ;;  %p1355_p12 = scmp.lt.s32.totalorder %s1438_s15, %s1438_s15 }
  0x1b   :  { %p1351_p11 = scmp.ne.s32.totalorder %s1438_s15, %s1350_s8  ;;  %p1356_p13 = scmp.lt.s32.totalorder %s1350_s8, %s1350_s8 }
  0x1d   :  { %p1357_p0 = por %p1356_p13, %p1355_p12 }
  0x1f   :  { %p1358_p1 = pnand %p1357_p0, %p1351_p11 }
  0x21   :  { %1361 = shalt.err (!%p1358_p1)
}
  0x22   :  { %22 = dma.hbm_to_vmem [thread:$0]  %s1641_s0, 2048, %s1438_s15, [#allocation4], %s1414_s24, %s1414_s24, %s1415_s25  }
  0x23   :  { %s1416_s10 = smov [#allocation8]   ;;  %s1362_s14 = scalar_lea.hbm %s1643_s2, 512 }
  0x24   :  { %s40_s11 = sshll.u32 %s1416_s10, 4  ;;  %p1363_p2 = scmp.ne.s32.totalorder %s1643_s2, %s1362_s14  ;;  %s41_s11 = int_to_ptr.vmem [resolvable:$true] %s40_s11 }
  0x25   :  { %p1366_p3 = scmp.lt.u32.totalorder %s1362_s14, %s1643_s2 }
  0x27   :  { %p1368_p4 = pnand %p1366_p3, %p1363_p2 }
  0x29   :  { %1371 = shalt.err (!%p1368_p4)
}
  0x2a   :  { %s1372_s20 = scalar_lea.vmem %s41_s11, 512  ;;  %p1377_p6 = scmp.lt.s32.totalorder %s41_s11, %s41_s11 }
  0x2b   :  { %p1373_p5 = scmp.ne.s32.totalorder %s41_s11, %s1372_s20  ;;  %p1378_p7 = scmp.lt.s32.totalorder %s1372_s20, %s1372_s20 }
  0x2d   :  { %p1379_p8 = por %p1378_p7, %p1377_p6 }
  0x2f   :  { %p1380_p9 = pnand %p1379_p8, %p1373_p5 }
  0x31   :  { %1383 = shalt.err (!%p1380_p9)
}
  0x32   :  { %46 = dma.hbm_to_vmem [thread:$0]  %s1643_s2, 512, %s41_s11, [#allocation7], %s1414_s24, %s1414_s24, %s1415_s25  }
  0x33   :  { %1406 = dma.done.wait [#allocation4], 2048  }
  0x34   :  { %1407 = vsyncadd [#allocation4], 4294965248 }
  0x35   :  { %1408 = dma.done.wait [#allocation7], 768  }
  0x36   :  { %1409 = vsyncadd [#allocation7], 4294966528  ;;  %vm78_vm0 = vcmask 130048   ;;  %v56_v0 = vld [vmem:[#allocation6] sm:$0xff]  ;;  %v57_v1 = vld [vmem:[#allocation6 + $0x8] sm:$0xff]  ;;  %vm272_vm1 = vcmask 261120  }
  0x37   :  { %v62_v2 = vld [vmem:[#allocation3] sm:$0xff]  ;;  %v1276_v3 = vpack.c.bf16 %v57_v1, %v56_v0  ;;  %v63_v4 = vld [vmem:[#allocation3 + $0x8] sm:$0xff]  ;;  %v64_v5 = vld [vmem:[#allocation3 + $0x10] sm:$0xff]  ;;  %s1417_s2 = smov [#allocation9]  }
  0x38   :  { %1172 = vmatprep.mubr.msk.f32.mxu0 %vm78_vm0, %v62_v2  ;;  %v65_v6 = vld [vmem:[#allocation3 + $0x18] sm:$0xff]  ;;  %v66_v7 = vld [vmem:[#allocation3 + $0x20] sm:$0xff]  ;;  %v67_v8 = vld [vmem:[#allocation3 + $0x28] sm:$0xff]  ;;  %s1041_s21 = sshll.u32 %s1417_s2, 4  ;;  %s1042_s21 = int_to_ptr.vmem [resolvable:$true] %s1041_s21 }
  0x39   :  { %1277 = vmatprep.subr.bf16.mxu0 %v1276_v3  ;;  %v68_v9 = vld [vmem:[#allocation3 + $0x30] sm:$0xff]  ;;  %v69_v10 = vld [vmem:[#allocation3 + $0x38] sm:$0xff]  ;;  %v70_v11 = vld [vmem:[#allocation3 + $0x40] sm:$0xff]  ;;  %s1384_s22 = scalar_lea.vmem %s1042_s21, 4096  ;;  %p1389_p11 = scmp.lt.s32.totalorder %s1042_s21, %s1042_s21 }
  0x3a   :  { %1279 = vmatpush3.bf16.msra.mxu0 %v1276_v3  ;;  %v71_v12 = vld [vmem:[#allocation3 + $0x48] sm:$0xff]  ;;  %v72_v13 = vld [vmem:[#allocation3 + $0x50] sm:$0xff]  ;;  %v73_v14 = vld [vmem:[#allocation3 + $0x58] sm:$0xff]  ;;  %p1385_p10 = scmp.ne.s32.totalorder %s1042_s21, %s1384_s22  ;;  %p1390_p12 = scmp.lt.s32.totalorder %s1384_s22, %s1384_s22 }
  0x3b   :  { %v74_v15 = vld [vmem:[#allocation3 + $0x60] sm:$0xff]  ;;  %v75_v16 = vld [vmem:[#allocation3 + $0x68] sm:$0xff]  ;;  %v76_v17 = vld [vmem:[#allocation3 + $0x70] sm:$0xff] }
  0x3c   :  { %v77_v18 = vld [vmem:[#allocation3 + $0x78] sm:$0xff]  ;;  %v1506_v19 = vld [vmem:[#allocation8] sm:$0xff]  ;;  %v1522_v35 = vld [vmem:[#allocation8 + $0x10] sm:$0xff]  ;;  %p1391_p13 = por %p1390_p12, %p1389_p11 }
  0x3d   :  { %1173 = vmatmul.mubr.msk.f32.vlgmr.msra.gmra.mrb[0].mxu0 %vm78_vm0, %v63_v4  ;;  %1200 = vmatprep.mubr.msk.f32.mxu1 %vm78_vm0, %v1506_v19  ;;  %v1519_v32 = vld [vmem:[#allocation8 + $0x8] sm:$0xff]  ;;  %v1529_v39 = vld [vmem:[#allocation8 + $0x18] sm:$0xff] }
  0x3e   :  { %1175 = vmatprep.mubr.msk.f32.mxu0 %vm78_vm0, %v64_v5  ;;  %p1392_p0 = pnand %p1391_p13, %p1385_p10 }
  0x41   :  { %1176 = vmatmul.mubr.msk.f32.gmra.mrb[2].mxu0 %vm78_vm0, %v65_v6 }
  0x42   :  { %1178 = vmatprep.mubr.msk.f32.mxu0 %vm78_vm0, %v66_v7 }
  0x45   :  { %1179 = vmatmul.mubr.msk.f32.gmra.mrb[4].mxu0 %vm78_vm0, %v67_v8 }
  0x46   :  { %1181 = vmatprep.mubr.msk.f32.mxu0 %vm78_vm0, %v68_v9 }
  0x49   :  { %1182 = vmatmul.mubr.msk.f32.gmra.mrb[6].mxu0 %vm78_vm0, %v69_v10 }
  0x4a   :  { %1184 = vmatprep.mubr.msk.f32.mxu0 %vm78_vm0, %v70_v11 }
  0x4d   :  { %1185 = vmatmul.mubr.msk.f32.gmra.mrb[8].mxu0 %vm78_vm0, %v71_v12 }
  0x4e   :  { %1187 = vmatprep.mubr.msk.f32.mxu0 %vm78_vm0, %v72_v13 }
  0x51   :  { %1188 = vmatmul.mubr.msk.f32.gmra.mrb[10].mxu0 %vm78_vm0, %v73_v14 }
  0x52   :  { %1190 = vmatprep.mubr.msk.f32.mxu0 %vm78_vm0, %v74_v15 }
  0x55   :  { %1191 = vmatmul.mubr.msk.f32.gmra.mrb[12].mxu0 %vm78_vm0, %v75_v16 }
  0x56   :  { %1193 = vmatprep.mubr.msk.f32.mxu0 %vm78_vm0, %v76_v17 }
  0x59   :  { %1194 = vmatmul.mubr.msk.f32.gmra.mrb[14].mxu0 %vm78_vm0, %v77_v18 }
  0x5a   :  { %1240 = vmatprep.mubr.msk.f32.mxu0 %vm78_vm0, %v1506_v19 }
 0x110   :  { %v1174_v20 = vpop.f32.mrb[0].mxu0 }
 0x111   :  { %274 = vst.msk [vmem:[#allocation2 + $0x8] sm:$0xff] %vm272_vm1, %v1174_v20  ;;  %v193_v21 = vpop.f32.mrb[1].mxu0 }
 0x112   :  { %273 = vst.msk [vmem:[#allocation2] sm:$0xff] %vm272_vm1, %v193_v21 }
 0x114   :  { %v1177_v22 = vpop.f32.mrb[2].mxu0 }
 0x115   :  { %276 = vst.msk [vmem:[#allocation2 + $0x18] sm:$0xff] %vm272_vm1, %v1177_v22  ;;  %v203_v23 = vpop.f32.mrb[3].mxu0 }
 0x116   :  { %275 = vst.msk [vmem:[#allocation2 + $0x10] sm:$0xff] %vm272_vm1, %v203_v23 }
 0x118   :  { %v1180_v24 = vpop.f32.mrb[4].mxu0  ;;  %v290_v25 = vld [vmem:[#allocation2 + $0x8] sm:$0xff] }
 0x119   :  { %278 = vst.msk [vmem:[#allocation2 + $0x28] sm:$0xff] %vm272_vm1, %v1180_v24  ;;  %v213_v26 = vpop.f32.mrb[5].mxu0  ;;  %v289_v27 = vld [vmem:[#allocation2] sm:$0xff] }
 0x11a   :  { %277 = vst.msk [vmem:[#allocation2 + $0x20] sm:$0xff] %vm272_vm1, %v213_v26  ;;  %v1280_v28 = vpack.c.bf16 %v290_v25, %v289_v27 }
 0x11c   :  { %v1183_v29 = vpop.f32.mrb[6].mxu0  ;;  %1281 = vmatprep.subr.bf16.mxu1 %v1280_v28  ;;  %v393_v30 = vld [vmem:[#allocation2 + $0x18] sm:$0xff] }
 0x11d   :  { %280 = vst.msk [vmem:[#allocation2 + $0x38] sm:$0xff] %vm272_vm1, %v1183_v29  ;;  %v223_v31 = vpop.f32.mrb[7].mxu0  ;;  %1283 = vmatpush3.bf16.msra.mxu1 %v1280_v28  ;;  %v392_v33 = vld [vmem:[#allocation2 + $0x10] sm:$0xff] }
 0x11e   :  { %279 = vst.msk [vmem:[#allocation2 + $0x30] sm:$0xff] %vm272_vm1, %v223_v31  ;;  %v1284_v34 = vpack.c.bf16 %v393_v30, %v392_v33 }
 0x120   :  { %v1186_v36 = vpop.f32.mrb[8].mxu0  ;;  %1201 = vmatmul.mubr.msk.f32.vlgmr.msra.gmra.mrb[0].mxu1 %vm78_vm0, %v1519_v32  ;;  %1285 = vmatprep.subr.bf16.mxu1 %v1284_v34  ;;  %v485_v37 = vld [vmem:[#allocation2 + $0x28] sm:$0xff] }
 0x121   :  { %282 = vst.msk [vmem:[#allocation2 + $0x48] sm:$0xff] %vm272_vm1, %v1186_v36  ;;  %v233_v38 = vpop.f32.mrb[9].mxu0  ;;  %1287 = vmatpush3.bf16.msra.mxu1 %v1284_v34  ;;  %1203 = vmatprep.mubr.msk.f32.mxu1 %vm78_vm0, %v1522_v35  ;;  %v484_v40 = vld [vmem:[#allocation2 + $0x20] sm:$0xff] }
 0x122   :  { %281 = vst.msk [vmem:[#allocation2 + $0x40] sm:$0xff] %vm272_vm1, %v233_v38  ;;  %v1288_v41 = vpack.c.bf16 %v485_v37, %v484_v40 }
 0x124   :  { %1204 = vmatmul.mubr.msk.f32.gmra.mrb[2].mxu1 %vm78_vm0, %v1529_v39  ;;  %1289 = vmatprep.subr.bf16.mxu1 %v1288_v41  ;;  %v577_v42 = vld [vmem:[#allocation2 + $0x38] sm:$0xff]  ;;  %v1189_v43 = vpop.f32.mrb[10].mxu0 }
 0x125   :  { %1210 = vmatprep.mubr.msk.f32.mxu1 %vm78_vm0, %v1506_v19  ;;  %v576_v44 = vld [vmem:[#allocation2 + $0x30] sm:$0xff]  ;;  %284 = vst.msk [vmem:[#allocation2 + $0x58] sm:$0xff] %vm272_vm1, %v1189_v43  ;;  %v243_v45 = vpop.f32.mrb[11].mxu0 }
 0x126   :  { %v1292_v46 = vpack.c.bf16 %v577_v42, %v576_v44  ;;  %283 = vst.msk [vmem:[#allocation2 + $0x50] sm:$0xff] %vm272_vm1, %v243_v45 }
 0x128   :  { %1211 = vmatmul.mubr.msk.f32.vlgmr.msra.gmra.mrb[4].mxu1 %vm78_vm0, %v1519_v32  ;;  %v669_v47 = vld [vmem:[#allocation2 + $0x48] sm:$0xff]  ;;  %v1192_v48 = vpop.f32.mrb[12].mxu0 }
 0x129   :  { %1291 = vmatpush3.bf16.msra.mxu1 %v1288_v41  ;;  %1213 = vmatprep.mubr.msk.f32.mxu1 %vm78_vm0, %v1522_v35  ;;  %v668_v49 = vld [vmem:[#allocation2 + $0x40] sm:$0xff]  ;;  %286 = vst.msk [vmem:[#allocation2 + $0x68] sm:$0xff] %vm272_vm1, %v1192_v48  ;;  %v253_v50 = vpop.f32.mrb[13].mxu0 }
 0x12a   :  { %1293 = vmatprep.subr.bf16.mxu1 %v1292_v46  ;;  %v1296_v51 = vpack.c.bf16 %v669_v47, %v668_v49  ;;  %285 = vst.msk [vmem:[#allocation2 + $0x60] sm:$0xff] %vm272_vm1, %v253_v50 }
 0x12c   :  { %1214 = vmatmul.mubr.msk.f32.gmra.mrb[6].mxu1 %vm78_vm0, %v1529_v39  ;;  %1297 = vmatprep.subr.bf16.mxu0 %v1296_v51  ;;  %v1195_v52 = vpop.f32.mrb[14].mxu0  ;;  %v761_v53 = vld [vmem:[#allocation2 + $0x58] sm:$0xff] }
 0x12d   :  { %1299 = vmatpush3.bf16.msra.mxu0 %v1296_v51  ;;  %1220 = vmatprep.mubr.msk.f32.mxu1 %vm78_vm0, %v1506_v19  ;;  %288 = vst.msk [vmem:[#allocation2 + $0x78] sm:$0xff] %vm272_vm1, %v1195_v52  ;;  %v263_v54 = vpop.f32.mrb[15].mxu0  ;;  %v760_v55 = vld [vmem:[#allocation2 + $0x50] sm:$0xff] }
 0x12e   :  { %287 = vst.msk [vmem:[#allocation2 + $0x70] sm:$0xff] %vm272_vm1, %v263_v54  ;;  %v1300_v56 = vpack.c.bf16 %v761_v53, %v760_v55 }
 0x130   :  { %1221 = vmatmul.mubr.msk.f32.vlgmr.msra.gmra.mrb[8].mxu1 %vm78_vm0, %v1519_v32  ;;  %v853_v57 = vld [vmem:[#allocation2 + $0x68] sm:$0xff]  ;;  %1241 = vmatmul.mubr.msk.f32.vlgmr.msra.gmra.mrb[16].mxu0 %vm78_vm0, %v1519_v32 }
 0x131   :  { %1295 = vmatpush3.bf16.msra.mxu1 %v1292_v46  ;;  %1223 = vmatprep.mubr.msk.f32.mxu1 %vm78_vm0, %v1522_v35  ;;  %v852_v58 = vld [vmem:[#allocation2 + $0x60] sm:$0xff] }
 0x132   :  { %1301 = vmatprep.subr.bf16.mxu1 %v1300_v56  ;;  %v1304_v59 = vpack.c.bf16 %v853_v57, %v852_v58  ;;  %1243 = vmatprep.mubr.msk.f32.mxu0 %vm78_vm0, %v1522_v35 }
 0x134   :  { %1224 = vmatmul.mubr.msk.f32.gmra.mrb[10].mxu1 %vm78_vm0, %v1529_v39  ;;  %1305 = vmatprep.subr.bf16.mxu0 %v1304_v59  ;;  %v945_v60 = vld [vmem:[#allocation2 + $0x78] sm:$0xff] }
 0x135   :  { %1230 = vmatprep.mubr.msk.f32.mxu1 %vm78_vm0, %v1506_v19  ;;  %1307 = vmatpush3.bf16.msra.mxu0 %v1304_v59  ;;  %v944_v61 = vld [vmem:[#allocation2 + $0x70] sm:$0xff] }
 0x136   :  { %v1308_v62 = vpack.c.bf16 %v945_v60, %v944_v61  ;;  %1244 = vmatmul.mubr.msk.f32.gmra.mrb[18].mxu0 %vm78_vm0, %v1529_v39 }
 0x137   :  { %1260 = vmatprep.mubr.msk.f32.mxu0 %vm78_vm0, %v1506_v19 }
 0x138   :  { %1231 = vmatmul.mubr.msk.f32.vlgmr.msra.gmra.mrb[12].mxu1 %vm78_vm0, %v1519_v32 }
 0x139   :  { %1303 = vmatpush3.bf16.msra.mxu1 %v1300_v56  ;;  %1233 = vmatprep.mubr.msk.f32.mxu1 %vm78_vm0, %v1522_v35 }
 0x13a   :  { %1309 = vmatprep.subr.bf16.mxu1 %v1308_v62  ;;  %1261 = vmatmul.mubr.msk.f32.vlgmr.msra.gmra.mrb[20].mxu0 %vm78_vm0, %v1519_v32 }
 0x13b   :  { %1263 = vmatprep.mubr.msk.f32.mxu0 %vm78_vm0, %v1522_v35 }
 0x13c   :  { %1234 = vmatmul.mubr.msk.f32.gmra.mrb[14].mxu1 %vm78_vm0, %v1529_v39 }
 0x13d   :  { %1250 = vmatprep.mubr.msk.f32.mxu1 %vm78_vm0, %v1506_v19 }
 0x13e   :  { %1264 = vmatmul.mubr.msk.f32.gmra.mrb[22].mxu0 %vm78_vm0, %v1529_v39 }
 0x140   :  { %1251 = vmatmul.mubr.msk.f32.vlgmr.msra.gmra.mrb[16].mxu1 %vm78_vm0, %v1519_v32 }
 0x141   :  { %1311 = vmatpush3.bf16.msra.mxu1 %v1308_v62  ;;  %1253 = vmatprep.mubr.msk.f32.mxu1 %vm78_vm0, %v1522_v35 }
 0x144   :  { %1254 = vmatmul.mubr.msk.f32.gmra.mrb[18].mxu1 %vm78_vm0, %v1529_v39 }
 0x145   :  { %1270 = vmatprep.mubr.msk.f32.mxu1 %vm78_vm0, %v1506_v19 }
 0x148   :  { %1271 = vmatmul.mubr.msk.f32.vlgmr.msra.gmra.mrb[20].mxu1 %vm78_vm0, %v1519_v32 }
 0x149   :  { %1273 = vmatprep.mubr.msk.f32.mxu1 %vm78_vm0, %v1522_v35 }
 0x14c   :  { %1274 = vmatmul.mubr.msk.f32.gmra.mrb[22].mxu1 %vm78_vm0, %v1529_v39 }
 0x1f3   :  { %v1202_v63 = vpop.f32.mrb[0].mxu1 }
 0x1f4   :  { %389 = vst.msk [vmem:[#allocation9 + $0x8] sm:$0xff] %vm272_vm1, %v1202_v63  ;;  %v369_v0 = vpop.f32.mrb[1].mxu1 }
 0x1f5   :  { %388 = vst.msk [vmem:[#allocation9] sm:$0xff] %vm272_vm1, %v369_v0 }
 0x1f7   :  { %v1205_v1 = vpop.f32.mrb[2].mxu1 }
 0x1f8   :  { %391 = vst.msk [vmem:[#allocation9 + $0x18] sm:$0xff] %vm272_vm1, %v1205_v1  ;;  %v379_v2 = vpop.f32.mrb[3].mxu1 }
 0x1f9   :  { %390 = vst.msk [vmem:[#allocation9 + $0x10] sm:$0xff] %vm272_vm1, %v379_v2 }
 0x1fb   :  { %v1212_v3 = vpop.f32.mrb[4].mxu1 }
 0x1fc   :  { %481 = vst.msk [vmem:[#allocation9 + $0x28] sm:$0xff] %vm272_vm1, %v1212_v3  ;;  %v460_v4 = vpop.f32.mrb[5].mxu1 }
 0x1fd   :  { %480 = vst.msk [vmem:[#allocation9 + $0x20] sm:$0xff] %vm272_vm1, %v460_v4 }
 0x1ff   :  { %v1215_v5 = vpop.f32.mrb[6].mxu1 }
 0x200   :  { %483 = vst.msk [vmem:[#allocation9 + $0x38] sm:$0xff] %vm272_vm1, %v1215_v5  ;;  %v470_v6 = vpop.f32.mrb[7].mxu1 }
 0x201   :  { %482 = vst.msk [vmem:[#allocation9 + $0x30] sm:$0xff] %vm272_vm1, %v470_v6 }
 0x203   :  { %v1222_v7 = vpop.f32.mrb[8].mxu1  ;;  %v1242_v8 = vpop.f32.mrb[16].mxu0 }
 0x204   :  { %573 = vst.msk [vmem:[#allocation9 + $0x48] sm:$0xff] %vm272_vm1, %v1222_v7  ;;  %v552_v9 = vpop.f32.mrb[9].mxu1  ;;  %757 = vst.msk [vmem:[#allocation9 + $0x88] sm:$0xff] %vm272_vm1, %v1242_v8  ;;  %v736_v10 = vpop.f32.mrb[17].mxu0 }
 0x205   :  { %572 = vst.msk [vmem:[#allocation9 + $0x40] sm:$0xff] %vm272_vm1, %v552_v9  ;;  %756 = vst.msk [vmem:[#allocation9 + $0x80] sm:$0xff] %vm272_vm1, %v736_v10 }
 0x207   :  { %v1225_v11 = vpop.f32.mrb[10].mxu1 }
 0x208   :  { %575 = vst.msk [vmem:[#allocation9 + $0x58] sm:$0xff] %vm272_vm1, %v1225_v11  ;;  %v562_v12 = vpop.f32.mrb[11].mxu1 }
 0x209   :  { %574 = vst.msk [vmem:[#allocation9 + $0x50] sm:$0xff] %vm272_vm1, %v562_v12  ;;  %v1245_v13 = vpop.f32.mrb[18].mxu0 }
 0x20a   :  { %759 = vst.msk [vmem:[#allocation9 + $0x98] sm:$0xff] %vm272_vm1, %v1245_v13  ;;  %v746_v14 = vpop.f32.mrb[19].mxu0 }
 0x20b   :  { %v1232_v15 = vpop.f32.mrb[12].mxu1  ;;  %758 = vst.msk [vmem:[#allocation9 + $0x90] sm:$0xff] %vm272_vm1, %v746_v14 }
 0x20c   :  { %665 = vst.msk [vmem:[#allocation9 + $0x68] sm:$0xff] %vm272_vm1, %v1232_v15  ;;  %v644_v16 = vpop.f32.mrb[13].mxu1 }
 0x20d   :  { %664 = vst.msk [vmem:[#allocation9 + $0x60] sm:$0xff] %vm272_vm1, %v644_v16  ;;  %v1262_v17 = vpop.f32.mrb[20].mxu0 }
 0x20e   :  { %941 = vst.msk [vmem:[#allocation9 + $0xc8] sm:$0xff] %vm272_vm1, %v1262_v17  ;;  %v920_v18 = vpop.f32.mrb[21].mxu0 }
 0x20f   :  { %v1235_v19 = vpop.f32.mrb[14].mxu1  ;;  %940 = vst.msk [vmem:[#allocation9 + $0xc0] sm:$0xff] %vm272_vm1, %v920_v18 }
 0x210   :  { %667 = vst.msk [vmem:[#allocation9 + $0x78] sm:$0xff] %vm272_vm1, %v1235_v19  ;;  %v654_v20 = vpop.f32.mrb[15].mxu1 }
 0x211   :  { %666 = vst.msk [vmem:[#allocation9 + $0x70] sm:$0xff] %vm272_vm1, %v654_v20  ;;  %v1265_v21 = vpop.f32.mrb[22].mxu0 }
 0x212   :  { %943 = vst.msk [vmem:[#allocation9 + $0xd8] sm:$0xff] %vm272_vm1, %v1265_v21  ;;  %v930_v22 = vpop.f32.mrb[23].mxu0 }
 0x213   :  { %v1252_v23 = vpop.f32.mrb[16].mxu1  ;;  %942 = vst.msk [vmem:[#allocation9 + $0xd0] sm:$0xff] %vm272_vm1, %v930_v22 }
 0x214   :  { %849 = vst.msk [vmem:[#allocation9 + $0xa8] sm:$0xff] %vm272_vm1, %v1252_v23  ;;  %v828_v24 = vpop.f32.mrb[17].mxu1 }
 0x215   :  { %848 = vst.msk [vmem:[#allocation9 + $0xa0] sm:$0xff] %vm272_vm1, %v828_v24 }
 0x217   :  { %v1255_v25 = vpop.f32.mrb[18].mxu1 }
 0x218   :  { %851 = vst.msk [vmem:[#allocation9 + $0xb8] sm:$0xff] %vm272_vm1, %v1255_v25  ;;  %v838_v26 = vpop.f32.mrb[19].mxu1 }
 0x219   :  { %850 = vst.msk [vmem:[#allocation9 + $0xb0] sm:$0xff] %vm272_vm1, %v838_v26 }
 0x21b   :  { %v1272_v27 = vpop.f32.mrb[20].mxu1 }
 0x21c   :  { %1033 = vst.msk [vmem:[#allocation9 + $0xe8] sm:$0xff] %vm272_vm1, %v1272_v27  ;;  %v1012_v28 = vpop.f32.mrb[21].mxu1 }
 0x21d   :  { %1032 = vst.msk [vmem:[#allocation9 + $0xe0] sm:$0xff] %vm272_vm1, %v1012_v28 }
 0x21f   :  { %v1275_v29 = vpop.f32.mrb[22].mxu1 }
 0x220   :  { %1035 = vst.msk [vmem:[#allocation9 + $0xf8] sm:$0xff] %vm272_vm1, %v1275_v29  ;;  %v1022_v30 = vpop.f32.mrb[23].mxu1 }
 0x221   :  { %1034 = vst.msk [vmem:[#allocation9 + $0xf0] sm:$0xff] %vm272_vm1, %v1022_v30 }
 0x222   :  { %1395 = shalt.err (!%p1392_p0)
}
 0x223   :  { %s1396_s27 = scalar_lea.hbm %s1644_s3, 4096 }
 0x224   :  { %p1397_p1 = scmp.ne.s32.totalorder %s1644_s3, %s1396_s27  ;;  %p1400_p2 = scmp.lt.u32.totalorder %s1396_s27, %s1644_s3 }
 0x226   :  { %p1402_p3 = pnand %p1400_p2, %p1397_p1 }
 0x228   :  { %1405 = shalt.err (!%p1402_p3)
}
 0x229   :  { %1047 = dma.vmem_to_hbm [thread:$0]  %s1042_s21, 4096, %s1644_s3, [#allocation5], %s1414_s24, %s1414_s24, %s1415_s25  }
 0x22a   :  { %1410 = dma.done.wait [#allocation5], 4096  }
 0x22b   :  { %1411 = vsyncadd [#allocation5], 4294963200 }
 0x22c   :  { %1051 = vsyncpa [#allocation4], 1 }
 0x22d   :  { %1052 = vsyncpa [#allocation7], 1 }
 0x22e   :  { %1053 = vsyncpa [#allocation5], 1 }

</bundles_post_ra>
